<compile_context>
chip_gen: v5e
topology: v5e:2x2
jax: 0.10.0
libtpu: 0.0.40
codegen_flags: <defaults>
</compile_context>

<pallas_src>
import functools

import numpy as np
import jax
import jax.numpy as jnp
from jax.experimental import pallas as pl
from jax.experimental.pallas import tpu as pltpu

F32 = jnp.float32
BF16 = jnp.bfloat16
LANE = 128

VMEM_SPEC = pl.BlockSpec(memory_space=pltpu.MemorySpace.VMEM)


def rup(n, m=LANE):
    return ((n + m - 1) // m) * m


def _vmem_specs(n):
    return [VMEM_SPEC] * n


# ----------------------------- Pallas kernels -----------------------------

def _embed_kernel(t_ref, c_ref, wt0_ref, bt0_ref, wt1_ref, bt1_ref,
                  wl_ref, bl_ref, emb_ref, ctx_ref):
    # time embedding: Linear(1 -> ted) is an outer product done on the VPU.
    t = t_ref[...]                                        # (B, 1) f32
    e = t * wt0_ref[...] + bt0_ref[...]                   # (B, TEDp)
    e = e * jax.nn.sigmoid(e)                             # SiLU
    e = jnp.dot(e.astype(BF16), wt1_ref[...], preferred_element_type=F32) + bt1_ref[...]
    emb_ref[...] = e
    # label embedding -> length-1 cross-attention context.
    # TODO(synk): label embedding treated as a length-1 context sequence.
    c = jnp.dot(c_ref[...].astype(BF16), wl_ref[...], preferred_element_type=F32) + bl_ref[...]
    ctx_ref[...] = c.astype(BF16)


def _conv3x3_kernel(x_ref, w_ref, b_ref, o_ref, sbuf, *, bdims):
    B, H, W, Cin, Cout = bdims
    S = H * W
    sbuf[...] = jnp.zeros(sbuf.shape, sbuf.dtype)
    sbuf[:, 1:H + 1, 1:W + 1, :] = x_ref[...]
    acc = jnp.zeros((B * S, Cout), F32)
    for t in range(9):
        dy, dx = t // 3, t % 3
        p = sbuf[:, dy:dy + H, dx:dx + W, :]
        acc = acc + jnp.dot(p.reshape(B * S, Cin), w_ref[t],
                            preferred_element_type=F32)
    acc = acc + b_ref[...]
    o_ref[...] = acc.astype(BF16).reshape(B, H, W, Cout)


def _resblock_kernel(x_ref, g1_ref, b1_ref, gmap1_ref, w1_ref, c1b_ref,
                     emb_ref, we_ref, be_ref,
                     g2_ref, b2_ref, gmap2_ref, w2_ref, c2b_ref,
                     *rest, bdims, has_skip, eps=1e-5):
    if has_skip:
        ws_ref, bs_ref, o_ref, sb1, sb2 = rest
    else:
        o_ref, sb1, sb2 = rest
    B, H, W, Cin, Cmid = bdims
    S = H * W

    x = x_ref[...]                                        # (B,H,W,Cin) bf16
    xf = x.astype(F32).reshape(B, S, Cin)

    # GroupNorm1 + SiLU (centered two-pass via group-average matrix)
    m = jnp.mean(xf, axis=1)
    gm = jnp.dot(m, gmap1_ref[...], preferred_element_type=F32)
    d = xf - gm[:, None, :]
    gv = jnp.dot(jnp.mean(d * d, axis=1), gmap1_ref[...], preferred_element_type=F32)
    h = d * jax.lax.rsqrt(gv + eps)[:, None, :] * g1_ref[...] + b1_ref[...]
    h = h * jax.nn.sigmoid(h)

    # conv1: 3x3 same padding via zero-halo scratch + 9 shifted matmuls
    sb1[...] = jnp.zeros(sb1.shape, sb1.dtype)
    sb1[:, 1:H + 1, 1:W + 1, :] = h.reshape(B, H, W, Cin).astype(BF16)
    acc = jnp.zeros((B * S, Cmid), F32)
    for t in range(9):
        dy, dx = t // 3, t % 3
        p = sb1[:, dy:dy + H, dx:dx + W, :]
        acc = acc + jnp.dot(p.reshape(B * S, Cin), w1_ref[t],
                            preferred_element_type=F32)
    acc = acc + c1b_ref[...]

    # timestep embedding: SiLU -> Linear, broadcast over spatial positions
    e = emb_ref[...]
    e = e * jax.nn.sigmoid(e)
    e = jnp.dot(e.astype(BF16), we_ref[...], preferred_element_type=F32) + be_ref[...]
    hf = acc.reshape(B, S, Cmid) + e[:, None, :]

    # GroupNorm2 + SiLU
    m2 = jnp.mean(hf, axis=1)
    gm2 = jnp.dot(m2, gmap2_ref[...], preferred_element_type=F32)
    d2 = hf - gm2[:, None, :]
    gv2 = jnp.dot(jnp.mean(d2 * d2, axis=1), gmap2_ref[...], preferred_element_type=F32)
    h2 = d2 * jax.lax.rsqrt(gv2 + eps)[:, None, :] * g2_ref[...] + b2_ref[...]
    h2 = h2 * jax.nn.sigmoid(h2)
    # TODO(synk): dropout omitted (eval semantics / dropout=0).

    # conv2
    sb2[...] = jnp.zeros(sb2.shape, sb2.dtype)
    sb2[:, 1:H + 1, 1:W + 1, :] = h2.reshape(B, H, W, Cmid).astype(BF16)
    acc2 = jnp.zeros((B * S, Cmid), F32)
    for t in range(9):
        dy, dx = t // 3, t % 3
        p = sb2[:, dy:dy + H, dx:dx + W, :]
        acc2 = acc2 + jnp.dot(p.reshape(B * S, Cmid), w2_ref[t],
                              preferred_element_type=F32)
    acc2 = acc2 + c2b_ref[...]

    # skip connection (fused into the same kernel epilogue)
    xflat = x.reshape(B * S, Cin)
    if has_skip:
        skip = jnp.dot(xflat, ws_ref[...], preferred_element_type=F32) + bs_ref[...]
    else:
        skip = xflat.astype(F32)
    o_ref[...] = (acc2 + skip).astype(BF16).reshape(B, H, W, Cmid)


def _spatial_transformer_kernel(*refs, bdims, n_layers, heads, eps=1e-5):
    B, H, W, C, Cp = bdims
    S = H * W
    dh = C // heads
    scale = float(dh) ** -0.5
    ffh = 4 * C

    x_ref, ctx_ref = refs[0], refs[1]
    gng, gnb, gmap = refs[2], refs[3], refs[4]
    pin_w, pin_b = refs[5], refs[6]
    base, per = 7, 20
    layer_params = [refs[base + i * per: base + (i + 1) * per] for i in range(n_layers)]
    pout_w, pout_b = refs[base + n_layers * per], refs[base + n_layers * per + 1]
    o_ref = refs[base + n_layers * per + 2]

    lane = jax.lax.broadcasted_iota(jnp.int32, (1, Cp), 1)
    cmask = (lane < C).astype(F32)                                 # (1, Cp)
    hlane = jax.lax.broadcasted_iota(jnp.int32, (1, 1, Cp), 2)     # (1, 1, Cp)

    def layer_norm(v, g_ref, b_ref):
        mu = jnp.sum(v, axis=-1, keepdims=True) * (1.0 / C)
        dv = (v - mu) * cmask
        var = jnp.sum(dv * dv, axis=-1, keepdims=True) * (1.0 / C)
        return dv * jax.lax.rsqrt(var + eps) * g_ref[...] + b_ref[...]

    def attend(q, k, v):
        # all heads in one body: per-head channel masks, full-width MXU matmuls
        out = jnp.zeros((B, S, Cp), F32)
        for hd in range(heads):
            hm = ((hlane >= hd * dh) & (hlane < (hd + 1) * dh)).astype(BF16)
            s = jnp.einsum("bqc,bkc->bqk", q, k * hm,
                           preferred_element_type=F32) * scale
            s = s - jnp.max(s, axis=-1, keepdims=True)
            p = jnp.exp(s)
            p = p * pl.reciprocal(jnp.sum(p, axis=-1, keepdims=True), approx=True)
            out = out + jnp.einsum("bqk,bkc->bqc", p.astype(BF16), v * hm,
                                   preferred_element_type=F32)
        return out

    x = x_ref[...]                                        # (B,H,W,Cp) bf16
    xf = x.astype(F32).reshape(B, S, Cp)
    # GroupNorm (no activation)
    m = jnp.mean(xf, axis=1)
    gm = jnp.dot(m, gmap[...], preferred_element_type=F32)
    d = xf - gm[:, None, :]
    gv = jnp.dot(jnp.mean(d * d, axis=1), gmap[...], preferred_element_type=F32)
    h = d * jax.lax.rsqrt(gv + eps)[:, None, :] * gng[...] + gnb[...]
    # proj_in (1x1 conv)
    h = jnp.dot(h.reshape(B * S, Cp).astype(BF16), pin_w[...],
                preferred_element_type=F32) + pin_b[...]
    ctxv = ctx_ref[...]                                   # (B, CTXp) bf16

    for lp in layer_params:
        (l1g, l1b, wqkv, bqkv, wo1, bo1,
         l2g, l2b, wq2, bq2, wkv2, bkv2, wo2, bo2,
         l3g, l3b, wf1, bf1, wf2, bf2) = lp
        # --- self attention (fused Q|K|V projection) ---
        n1 = layer_norm(h, l1g, l1b)
        qkv = jnp.dot(n1.astype(BF16), wqkv[...], preferred_element_type=F32) + bqkv[...]
        q = qkv[:, :Cp].astype(BF16).reshape(B, S, Cp)
        k = qkv[:, Cp:2 * Cp].astype(BF16).reshape(B, S, Cp)
        v = qkv[:, 2 * Cp:3 * Cp].astype(BF16).reshape(B, S, Cp)
        a = attend(q, k, v).reshape(B * S, Cp)
        h = h + jnp.dot(a.astype(BF16), wo1[...], preferred_element_type=F32) + bo1[...]
        # --- cross attention (context = length-1 sequence) ---
        n2 = layer_norm(h, l2g, l2b)
        q = (jnp.dot(n2.astype(BF16), wq2[...], preferred_element_type=F32)
             + bq2[...]).astype(BF16).reshape(B, S, Cp)
        kv = jnp.dot(ctxv, wkv2[...], preferred_element_type=F32) + bkv2[...]
        k = kv[:, :Cp].astype(BF16).reshape(B, 1, Cp)
        v = kv[:, Cp:2 * Cp].astype(BF16).reshape(B, 1, Cp)
        a = attend(q, k, v).reshape(B * S, Cp)
        h = h + jnp.dot(a.astype(BF16), wo2[...], preferred_element_type=F32) + bo2[...]
        # --- feed forward: GEGLU fused with its projection ---
        n3 = layer_norm(h, l3g, l3b)
        f = jnp.dot(n3.astype(BF16), wf1[...], preferred_element_type=F32) + bf1[...]
        # TODO(synk): jax.nn.gelu uses the tanh approximation vs torch erf GELU.
        g = f[:, :ffh] * jax.nn.gelu(f[:, ffh:2 * ffh])
        h = h + jnp.dot(g.astype(BF16), wf2[...], preferred_element_type=F32) + bf2[...]

    # proj_out + residual
    hp = jnp.dot(h.astype(BF16), pout_w[...], preferred_element_type=F32) + pout_b[...]
    o_ref[...] = (x.astype(F32).reshape(B * S, Cp) + hp).astype(BF16).reshape(B, H, W, Cp)


def _out_head_kernel(x_ref, g_ref, b_ref, gmap_ref, w_ref, bw_ref, o_ref,
                     *, bdims, eps=1e-5):
    B, H, W, Cp, Coutp = bdims
    S = H * W
    xf = x_ref[...].astype(F32).reshape(B, S, Cp)
    m = jnp.mean(xf, axis=1)
    gm = jnp.dot(m, gmap_ref[...], preferred_element_type=F32)
    d = xf - gm[:, None, :]
    gv = jnp.dot(jnp.mean(d * d, axis=1), gmap_ref[...], preferred_element_type=F32)
    h = d * jax.lax.rsqrt(gv + eps)[:, None, :] * g_ref[...] + b_ref[...]
    h = h * jax.nn.sigmoid(h)
    y = jnp.dot(h.reshape(B * S, Cp).astype(BF16), w_ref[...],
                preferred_element_type=F32) + bw_ref[...]
    o_ref[...] = y.reshape(B, H, W, Coutp)


# ----------------------------- kernel wrappers -----------------------------

def embeddings(p, t, ctx_raw):
    B = t.shape[0]
    tedp = p["t1"]["w"].shape[1]
    ctxp = p["lab"]["w"].shape[1]
    return pl.pallas_call(
        _embed_kernel,
        out_shape=(jax.ShapeDtypeStruct((B, tedp), F32),
                   jax.ShapeDtypeStruct((B, ctxp), BF16)),
        in_specs=_vmem_specs(8),
        out_specs=(VMEM_SPEC, VMEM_SPEC),
    )(t, ctx_raw, p["t0"]["w"], p["t0"]["b"], p["t1"]["w"], p["t1"]["b"],
      p["lab"]["w"], p["lab"]["b"])


def conv3x3(p, x):
    B, H, W, Cin_p = x.shape
    Cout_p = p["w"].shape[2]
    kernel = functools.partial(_conv3x3_kernel, bdims=(B, H, W, Cin_p, Cout_p))
    return pl.pallas_call(
        kernel,
        out_shape=jax.ShapeDtypeStruct((B, H, W, Cout_p), BF16),
        in_specs=_vmem_specs(3),
        out_specs=VMEM_SPEC,
        scratch_shapes=[pltpu.VMEM((B, H + 2, W + 2, Cin_p), BF16)],
    )(x, p["w"], p["b"])


def res_block(p, x, emb):
    B, H, W, _ = x.shape
    Cin_p = p["conv1"]["w"].shape[1]
    Cmid_p = p["conv1"]["w"].shape[2]
    has_skip = "skip" in p
    args = [x,
            p["gn1"]["g"], p["gn1"]["b"], p["gn1"]["gmap"],
            p["conv1"]["w"], p["conv1"]["b"],
            emb, p["emb"]["w"], p["emb"]["b"],
            p["gn2"]["g"], p["gn2"]["b"], p["gn2"]["gmap"],
            p["conv2"]["w"], p["conv2"]["b"]]
    if has_skip:
        args += [p["skip"]["w"], p["skip"]["b"]]
    kernel = functools.partial(_resblock_kernel,
                               bdims=(B, H, W, Cin_p, Cmid_p), has_skip=has_skip)
    return pl.pallas_call(
        kernel,
        out_shape=jax.ShapeDtypeStruct((B, H, W, Cmid_p), BF16),
        in_specs=_vmem_specs(len(args)),
        out_specs=VMEM_SPEC,
        scratch_shapes=[pltpu.VMEM((B, H + 2, W + 2, Cin_p), BF16),
                        pltpu.VMEM((B, H + 2, W + 2, Cmid_p), BF16)],
    )(*args)


def spatial_transformer(p, x, ctx):
    B, H, W, Cp = x.shape
    C = p["c"]
    heads = p["heads"]
    args = [x, ctx, p["gn"]["g"], p["gn"]["b"], p["gn"]["gmap"],
            p["pin"]["w"], p["pin"]["b"]]
    for lp in p["blocks"]:
        args += [lp["ln1"]["g"], lp["ln1"]["b"], lp["wqkv"], lp["bqkv"],
                 lp["wo1"], lp["bo1"],
                 lp["ln2"]["g"], lp["ln2"]["b"], lp["wq2"], lp["bq2"],
                 lp["wkv2"], lp["bkv2"], lp["wo2"], lp["bo2"],
                 lp["ln3"]["g"], lp["ln3"]["b"], lp["wff1"], lp["bff1"],
                 lp["wff2"], lp["bff2"]]
    args += [p["pout"]["w"], p["pout"]["b"]]
    kernel = functools.partial(_spatial_transformer_kernel,
                               bdims=(B, H, W, C, Cp),
                               n_layers=len(p["blocks"]), heads=heads)
    return pl.pallas_call(
        kernel,
        out_shape=jax.ShapeDtypeStruct((B, H, W, Cp), BF16),
        in_specs=_vmem_specs(len(args)),
        out_specs=VMEM_SPEC,
    )(*args)


def out_head(p, x):
    B, H, W, Cp = x.shape
    Coutp = p["proj"]["w"].shape[1]
    kernel = functools.partial(_out_head_kernel, bdims=(B, H, W, Cp, Coutp))
    return pl.pallas_call(
        kernel,
        out_shape=jax.ShapeDtypeStruct((B, H, W, Coutp), F32),
        in_specs=_vmem_specs(6),
        out_specs=VMEM_SPEC,
    )(x, p["gn"]["g"], p["gn"]["b"], p["gn"]["gmap"], p["proj"]["w"], p["proj"]["b"])


# ----------------------------- parameter init -----------------------------

def _pad_linear(rng, din, dout, row_pos=None, rows_p=None, scale=0.05, w_dtype=BF16):
    if row_pos is None:
        row_pos, rows_p = np.arange(din), rup(din)
    row_pos = np.asarray(row_pos)
    w = np.zeros((rows_p, rup(dout)), np.float32)
    w[row_pos[:, None], np.arange(dout)[None, :]] = scale * rng.standard_normal((din, dout))
    return {"w": jnp.asarray(w, w_dtype), "b": jnp.zeros((1, rup(dout)), F32)}


def _pad_conv3(rng, cin, cout, row_pos=None, rows_p=None, scale=0.05):
    if row_pos is None:
        row_pos, rows_p = np.arange(cin), rup(cin)
    row_pos = np.asarray(row_pos)
    w = np.zeros((9, rows_p, rup(cout)), np.float32)
    w[:, row_pos[:, None], np.arange(cout)[None, :]] = scale * rng.standard_normal((9, cin, cout))
    return {"w": jnp.asarray(w, BF16), "b": jnp.zeros((1, rup(cout)), F32)}


def _gn_init(c, row_pos=None, rows_p=None, groups=32):
    if row_pos is None:
        row_pos, rows_p = np.arange(c), rup(c)
    row_pos = np.asarray(row_pos)
    g = np.zeros((1, rows_p), np.float32)
    g[0, row_pos] = 1.0
    b = np.zeros((1, rows_p), np.float32)
    cg = max(c // groups, 1)
    gid = np.arange(c) // cg
    same = (gid[:, None] == gid[None, :]).astype(np.float32) / cg
    gmap = np.zeros((rows_p, rows_p), np.float32)
    gmap[row_pos[:, None], row_pos[None, :]] = same
    return {"g": jnp.asarray(g), "b": jnp.asarray(b), "gmap": jnp.asarray(gmap)}


def _ln_init(c):
    cp = rup(c)
    g = np.zeros((1, cp), np.float32)
    g[0, :c] = 1.0
    return {"g": jnp.asarray(g), "b": jnp.zeros((1, cp), F32)}


def _resblock_init(rng, cin, cout, emb_dim, row_pos=None, rows_p=None):
    if row_pos is None:
        row_pos, rows_p = np.arange(cin), rup(cin)
    row_pos = np.asarray(row_pos)
    p = {"gn1": _gn_init(cin, row_pos, rows_p),
         "conv1": _pad_conv3(rng, cin, cout, row_pos, rows_p),
         "emb": _pad_linear(rng, emb_dim, cout),
         "gn2": _gn_init(cout),
         "conv2": _pad_conv3(rng, cout, cout)}
    compact = np.array_equal(row_pos, np.arange(cin)) and rows_p == rup(cout)
    if cin != cout:
        p["skip"] = _pad_linear(rng, cin, cout, row_pos, rows_p)
    elif not compact:
        # identity skip through a scattered channel layout: exact 0/1 gather
        w = np.zeros((rows_p, rup(cout)), np.float32)
        w[row_pos, np.arange(cout)] = 1.0
        p["skip"] = {"w": jnp.asarray(w, BF16), "b": jnp.zeros((1, rup(cout)), F32)}
    return p


def _st_block_init(rng, c, ctx_dim, scale=0.05):
    cp, xp = rup(c), rup(ctx_dim)

    def wmat(din, dinp, dout, doutp):
        w = np.zeros((dinp, doutp), np.float32)
        w[:din, :dout] = scale * rng.standard_normal((din, dout))
        return w

    wqkv = np.concatenate([wmat(c, cp, c, cp), wmat(c, cp, c, cp), wmat(c, cp, c, cp)], axis=1)
    wkv2 = np.concatenate([wmat(ctx_dim, xp, c, cp), wmat(ctx_dim, xp, c, cp)], axis=1)
    ffh = 4 * c
    return {
        "ln1": _ln_init(c),
        "wqkv": jnp.asarray(wqkv, BF16), "bqkv": jnp.zeros((1, 3 * cp), F32),
        "wo1": jnp.asarray(wmat(c, cp, c, cp), BF16), "bo1": jnp.zeros((1, cp), F32),
        "ln2": _ln_init(c),
        "wq2": jnp.asarray(wmat(c, cp, c, cp), BF16), "bq2": jnp.zeros((1, cp), F32),
        "wkv2": jnp.asarray(wkv2, BF16), "bkv2": jnp.zeros((1, 2 * cp), F32),
        "wo2": jnp.asarray(wmat(c, cp, c, cp), BF16), "bo2": jnp.zeros((1, cp), F32),
        "ln3": _ln_init(c),
        "wff1": jnp.asarray(wmat(c, cp, 8 * c, rup(8 * c)), BF16),
        "bff1": jnp.zeros((1, rup(8 * c)), F32),
        "wff2": jnp.asarray(wmat(ffh, rup(ffh), c, cp), BF16),
        "bff2": jnp.zeros((1, cp), F32),
    }


def _st_init(rng, c, ctx_dim, heads, n_layers):
    return {"c": c, "heads": heads,
            "gn": _gn_init(c),
            "pin": _pad_linear(rng, c, c),
            "blocks": [_st_block_init(rng, c, ctx_dim) for _ in range(n_layers)],
            "pout": _pad_linear(rng, c, c)}


def _concat_placement(c1, c2):
    pos = np.concatenate([np.arange(c1), rup(c1) + np.arange(c2)])
    return pos, rup(c1) + rup(c2)


def build_unet(rng, cfg):
    M = cfg["model_channels"]
    ted = 4 * M
    heads = cfg["n_heads"]
    nL = cfg["transformer_n_layers"]
    ctxd = cfg["context_dim"]
    ncls = cfg["num_classes"]

    t0w = np.zeros((1, rup(ted)), np.float32)
    t0w[0, :ted] = 0.05 * rng.standard_normal(ted)
    embed = {"t0": {"w": jnp.asarray(t0w, F32), "b": jnp.zeros((1, rup(ted)), F32)},
             "t1": _pad_linear(rng, ted, ted),
             "lab": _pad_linear(rng, ncls, ctxd)}

    encoder = [[("conv", _pad_conv3(rng, cfg["in_channels"], M))]]
    ch, ds, input_chs = M, 1, []
    for level, mult in enumerate(cfg["channel_mult"]):
        for _ in range(cfg["num_res_blocks"]):
            layers = [("res", _resblock_init(rng, ch, mult * M, ted))]
            ch = mult * M
            if ds in cfg["attention_resolutions"]:
                layers.append(("attn", _st_init(rng, ch, ctxd, heads, nL)))
            encoder.append(layers)
            input_chs.append(ch)
        if level != len(cfg["channel_mult"]) - 1:
            encoder.append([("res", _resblock_init(rng, ch, ch, ted))])
            ds *= 2
            input_chs.append(ch)

    middle = [("res", _resblock_init(rng, ch, ch, ted)),
              ("attn", _st_init(rng, ch, ctxd, heads, nL)),
              ("res", _resblock_init(rng, ch, ch, ted))]

    decoder = []
    for level, mult in reversed(list(enumerate(cfg["channel_mult"]))):
        for i in range(cfg["num_res_blocks"] + 1):
            if not input_chs:
                break
            ich = input_chs.pop()
            pos, rows_p = _concat_placement(ch, ich)
            layers = [("res", _resblock_init(rng, ch + ich, mult * M, ted, pos, rows_p))]
            ch = mult * M
            if ds in cfg["attention_resolutions"]:
                layers.append(("attn", _st_init(rng, ch, ctxd, heads, nL)))
            if level and i == cfg["num_res_blocks"]:
                layers.append(("res", _resblock_init(rng, ch, ch, ted)))
                ds //= 2
            decoder.append(layers)

    out = {"gn": _gn_init(ch), "proj": _pad_linear(rng, ch, cfg["out_channels"]),
           "cout": cfg["out_channels"]}
    return {"embed": embed, "encoder": encoder, "middle": middle,
            "decoder": decoder, "out": out}


# ----------------------------- forward -----------------------------

def unet_forward(params, x_nchw, time_step, context):
    B, Cin, H, W = x_nchw.shape
    x = jnp.transpose(x_nchw, (0, 2, 3, 1)).astype(F32)           # NCHW -> NHWC
    x = jnp.pad(x, ((0, 0), (0, 0), (0, 0), (0, rup(Cin) - Cin))).astype(BF16)

    t = time_step.astype(F32).reshape(-1, 1)
    ctx_raw = context.astype(F32)
    ncls = ctx_raw.shape[1]
    ctx_raw = jnp.pad(ctx_raw, ((0, 0), (0, rup(ncls) - ncls)))
    emb, ctx = embeddings(params["embed"], t, ctx_raw)

    def run_seq(layers, h):
        for kind, p in layers:
            if kind == "conv":
                h = conv3x3(p, h)
            elif kind == "res":
                h = res_block(p, h, emb)
            else:                                                 # "attn"
                h = spatial_transformer(p, h, ctx)
        return h

    hs = []
    h = x
    for layers in params["encoder"]:
        h = run_seq(layers, h)
        hs.append(h)
    h = run_seq(params["middle"], h)
    for layers in params["decoder"]:
        h = run_seq(layers, jnp.concatenate([h, hs.pop()], axis=-1))
    y = out_head(params["out"], h)
    y = y[..., :params["out"]["cout"]]
    return jnp.transpose(y, (0, 3, 1, 2))                         # NHWC -> NCHW


# ----------------------------- main -----------------------------

if __name__ == "__main__":
    cfg = dict(image_size=8, in_channels=4, model_channels=32, out_channels=4,
               num_res_blocks=1, n_heads=4, transformer_n_layers=1,
               attention_resolutions=[2], channel_mult=[1, 2],
               num_classes=24, context_dim=128)

    params = build_unet(np.random.default_rng(0), cfg)

    key = jax.random.PRNGKey(0)
    kx, kt, kc = jax.random.split(key, 3)
    B = 2
    x = jax.random.normal(kx, (B, cfg["in_channels"], cfg["image_size"], cfg["image_size"]),
                          F32)
    time_step = jax.random.uniform(kt, (B,), F32, 0.0, 1000.0)
    context = jax.random.normal(kc, (B, cfg["num_classes"]), F32)

    out = unet_forward(params, x, time_step, context)
    out = jax.block_until_ready(out)
    assert out.shape == (B, cfg["out_channels"], cfg["image_size"], cfg["image_size"])
    assert bool(jnp.all(jnp.isfinite(out)))
    print("KERNEL_OK")
</pallas_src>

<mosaic_0001>
module attributes {stable_mosaic.version = 11 : i64} {
  func.func @_embed_kernel(%arg0: memref<2x1xf32, #tpu.memory_space<vmem>>, %arg1: memref<2x128xf32, #tpu.memory_space<vmem>>, %arg2: memref<1x128xf32, #tpu.memory_space<vmem>>, %arg3: memref<1x128xf32, #tpu.memory_space<vmem>>, %arg4: memref<128x128xbf16, #tpu.memory_space<vmem>>, %arg5: memref<1x128xf32, #tpu.memory_space<vmem>>, %arg6: memref<128x128xbf16, #tpu.memory_space<vmem>>, %arg7: memref<1x128xf32, #tpu.memory_space<vmem>>, %arg8: memref<2x128xf32, #tpu.memory_space<vmem>>, %arg9: memref<2x128xbf16, #tpu.memory_space<vmem>>) attributes {dimension_semantics = [], scalar_prefetch = 0 : i64, scratch_operands = 0 : i64, tpu.core_type = #tpu.core_type<tc>} {
    %c0 = arith.constant 0 : index
    %c0_0 = arith.constant 0 : index
    %0 = vector.load %arg0[%c0, %c0_0] : memref<2x1xf32, #tpu.memory_space<vmem>>, vector<2x1xf32>
    %c0_1 = arith.constant 0 : index
    %c0_2 = arith.constant 0 : index
    %1 = vector.load %arg2[%c0_1, %c0_2] : memref<1x128xf32, #tpu.memory_space<vmem>>, vector<1x128xf32>
    %2 = vector.broadcast %0 : vector<2x1xf32> to vector<2x128xf32>
    %3 = vector.broadcast %1 : vector<1x128xf32> to vector<2x128xf32>
    %4 = arith.mulf %2, %3 : vector<2x128xf32>
    %c0_3 = arith.constant 0 : index
    %c0_4 = arith.constant 0 : index
    %5 = vector.load %arg3[%c0_3, %c0_4] : memref<1x128xf32, #tpu.memory_space<vmem>>, vector<1x128xf32>
    %6 = vector.broadcast %5 : vector<1x128xf32> to vector<2x128xf32>
    %7 = arith.addf %4, %6 : vector<2x128xf32>
    %8 = arith.negf %7 : vector<2x128xf32>
    %9 = math.exp %8 : vector<2x128xf32>
    %cst = arith.constant 1.000000e+00 : f32
    %10 = vector.broadcast %cst : f32 to vector<2x128xf32>
    %11 = arith.addf %10, %9 : vector<2x128xf32>
    %12 = arith.divf %10, %11 : vector<2x128xf32>
    %13 = arith.mulf %7, %12 : vector<2x128xf32>
    %14 = arith.truncf %13 : vector<2x128xf32> to vector<2x128xbf16>
    %c0_5 = arith.constant 0 : index
    %c0_6 = arith.constant 0 : index
    %15 = vector.load %arg4[%c0_5, %c0_6] : memref<128x128xbf16, #tpu.memory_space<vmem>>, vector<128x128xbf16>
    %cst_7 = arith.constant dense<0.000000e+00> : vector<2x128xf32>
    %16 = tpu.matmul %14, %15, %cst_7 {dimension_numbers = #tpu.dot_dimension_numbers<[1], [0], [0], [1], [0, 0, 1, 1], [], []>} : vector<2x128xbf16>, vector<128x128xbf16>, vector<2x128xf32> -> vector<2x128xf32>
    %c0_8 = arith.constant 0 : index
    %c0_9 = arith.constant 0 : index
    %17 = vector.load %arg5[%c0_8, %c0_9] : memref<1x128xf32, #tpu.memory_space<vmem>>, vector<1x128xf32>
    %18 = vector.broadcast %17 : vector<1x128xf32> to vector<2x128xf32>
    %19 = arith.addf %16, %18 : vector<2x128xf32>
    %c0_10 = arith.constant 0 : index
    %c0_11 = arith.constant 0 : index
    %20 = vector.load %arg8[%c0_10, %c0_11] : memref<2x128xf32, #tpu.memory_space<vmem>>, vector<2x128xf32>
    tpu.vector_store %arg8[%c0_10, %c0_11], %19 {strides = array<i32>} : memref<2x128xf32, #tpu.memory_space<vmem>>, vector<2x128xf32>,
    %c0_12 = arith.constant 0 : index
    %c0_13 = arith.constant 0 : index
    %21 = vector.load %arg1[%c0_12, %c0_13] : memref<2x128xf32, #tpu.memory_space<vmem>>, vector<2x128xf32>
    %22 = arith.truncf %21 : vector<2x128xf32> to vector<2x128xbf16>
    %c0_14 = arith.constant 0 : index
    %c0_15 = arith.constant 0 : index
    %23 = vector.load %arg6[%c0_14, %c0_15] : memref<128x128xbf16, #tpu.memory_space<vmem>>, vector<128x128xbf16>
    %cst_16 = arith.constant dense<0.000000e+00> : vector<2x128xf32>
    %24 = tpu.matmul %22, %23, %cst_16 {dimension_numbers = #tpu.dot_dimension_numbers<[1], [0], [0], [1], [0, 0, 1, 1], [], []>} : vector<2x128xbf16>, vector<128x128xbf16>, vector<2x128xf32> -> vector<2x128xf32>
    %c0_17 = arith.constant 0 : index
    %c0_18 = arith.constant 0 : index
    %25 = vector.load %arg7[%c0_17, %c0_18] : memref<1x128xf32, #tpu.memory_space<vmem>>, vector<1x128xf32>
    %26 = vector.broadcast %25 : vector<1x128xf32> to vector<2x128xf32>
    %27 = arith.addf %24, %26 : vector<2x128xf32>
    %28 = arith.truncf %27 : vector<2x128xf32> to vector<2x128xbf16>
    %c0_19 = arith.constant 0 : index
    %c0_20 = arith.constant 0 : index
    %29 = vector.load %arg9[%c0_19, %c0_20] : memref<2x128xbf16, #tpu.memory_space<vmem>>, vector<2x128xbf16>
    tpu.vector_store %arg9[%c0_19, %c0_20], %28 {strides = array<i32>} : memref<2x128xbf16, #tpu.memory_space<vmem>>, vector<2x128xbf16>,
    return
  }
}

</mosaic_0001>

<bundles_post_ra>
// kernel: tpu_custom_call.1
= control target key start
LH: loop header
LB: loop body
LE: loop exit
PB: predicated region body
PF: predicated region fallthrough
CT: control target
= control target key end

     0   :  { %15 = vsyncpa [#allocation3], 0  ;;  %s591_s0 = inlined_call_operand.vmem [shape: f32[2,1], index: 0, kind: input, shape index: {}]   ;;  %s592_s1 = inlined_call_operand.vmem [shape: f32[2,128], index: 1, kind: input, shape index: {}]   ;;  %s593_s2 = inlined_call_operand.vmem [shape: f32[1,128], index: 2, kind: input, shape index: {}]   ;;  %s594_s3 = inlined_call_operand.vmem [shape: f32[1,128], index: 3, kind: input, shape index: {}]   ;;  %s595_s4 = inlined_call_operand.hbm [shape: bf16[128,128], index: 4, kind: input, shape index: {}]   ;;  %s596_s5 = inlined_call_operand.vmem [shape: f32[1,128], index: 5, kind: input, shape index: {}]   ;;  %s597_s6 = inlined_call_operand.hbm [shape: bf16[128,128], index: 6, kind: input, shape index: {}]   ;;  %s598_s7 = inlined_call_operand.vmem [shape: f32[1,128], index: 7, kind: input, shape index: {}]   ;;  %s599_s8 = inlined_call_operand.hbm [shape: f32[2,128], index: 8, kind: output, shape index: {0}]   ;;  %s600_s9 = inlined_call_operand.hbm [shape: bf16[2,128], index: 9, kind: output, shape index: {1}]  }
   0x1   :  { %16 = vsyncpa [#allocation6], 0 }
   0x2   :  { %17 = vsyncpa [#allocation4], 0 }
   0x3   :  { %18 = vsyncpa [#allocation9], 0  ;;  %s31_s11 = sshll.u32 %s595_s4, 4  ;;  %s504_s12 = smov [#allocation2]   ;;  %s32_s11 = int_to_ptr.hbm [resolvable:$true] %s31_s11 }
   0x4   :  { %s33_s13 = sshll.u32 %s504_s12, 4  ;;  %s46_s16 = sshll.u32 %s597_s6, 4  ;;  %s34_s13 = int_to_ptr.vmem [resolvable:$true] %s33_s13  ;;  %s47_s16 = int_to_ptr.hbm [resolvable:$true] %s46_s16 }
   0x5   :  { %s505_s17 = smov 64   ;;  %s506_s18 = smov 4  }
   0x6   :  { %39 = dma.hbm_to_vmem [thread:$0]  %s32_s11, 1024, %s34_s13, [#allocation3], %s505_s17, %s505_s17, %s506_s18  }
   0x7   :  { %s507_s19 = smov [#allocation5]  }
   0x8   :  { %s48_s20 = sshll.u32 %s507_s19, 4  ;;  %s49_s20 = int_to_ptr.vmem [resolvable:$true] %s48_s20 }
   0x9   :  { %54 = dma.hbm_to_vmem [thread:$0]  %s47_s16, 1024, %s49_s20, [#allocation6], %s505_s17, %s505_s17, %s506_s18  }
   0xa   :  { %496 = dma.done.wait [#allocation3], 1024  }
   0xb   :  { %497 = vsyncadd [#allocation3], 4294966272 }
   0xc   :  { %498 = dma.done.wait [#allocation6], 1024  }
   0xd   :  { %499 = vsyncadd [#allocation6], 4294966272  ;;  %v508_v0 = vmov 0   ;;  %v65_v1 = vld [vmem:[%s591_s0] sm:$0x3]  ;;  %v383_v2 = vld [vmem:[#allocation5 + $0x38] sm:$0xff] }
   0xe   :  { %391 = vset.pattern.permute.xlu0 %v508_v0  ;;  %254 = vmatpush.bf16.msra.mxu1 %v383_v2  ;;  %v382_v3 = vld [vmem:[#allocation5 + $0x30] sm:$0xff]  ;;  %v375_v4 = vld [vmem:[#allocation2 + $0x38] sm:$0xff]  ;;  %v381_v5 = vld [vmem:[#allocation5 + $0x28] sm:$0xff]  ;;  %s287_s29 = sshll.u32 %s600_s9, 4  ;;  %s510_s11 = smov [#allocation7]   ;;  %s288_s29 = int_to_ptr.hbm [resolvable:$true] %s287_s29 }
   0xf   :  { %69 = vperm.xlu0 %391, %v65_v1   ;;  %170 = vmatpush.bf16.msra.mxu0 %v375_v4  ;;  %v374_v6 = vld [vmem:[#allocation2 + $0x30] sm:$0xff]  ;;  %v380_v7 = vld [vmem:[#allocation5 + $0x20] sm:$0xff]  ;;  %v373_v8 = vld [vmem:[#allocation2 + $0x28] sm:$0xff]  ;;  %s276_s14 = sshll.u32 %s599_s8, 4  ;;  %s277_s14 = int_to_ptr.hbm [resolvable:$true] %s276_s14 }
  0x10   :  { %v379_v9 = vld [vmem:[#allocation5 + $0x18] sm:$0xff]  ;;  %v372_v10 = vld [vmem:[#allocation2 + $0x20] sm:$0xff]  ;;  %v378_v11 = vld [vmem:[#allocation5 + $0x10] sm:$0xff] }
  0x11   :  { %v371_v12 = vld [vmem:[#allocation2 + $0x18] sm:$0xff]  ;;  %v377_v13 = vld [vmem:[#allocation5 + $0x8] sm:$0xff]  ;;  %v370_v14 = vld [vmem:[#allocation2 + $0x10] sm:$0xff] }
  0x12   :  { %255 = vmatpush.bf16.msra.mxu1 %v382_v3  ;;  %v376_v15 = vld [vmem:[#allocation5] sm:$0xff]  ;;  %v369_v18 = vld [vmem:[#allocation2 + $0x8] sm:$0xff] }
  0x13   :  { %171 = vmatpush.bf16.msra.mxu0 %v374_v6  ;;  %v184_v16 = vld [vmem:[%s592_s1] sm:$0x3] }
  0x14   :  { %v185_v17 = vpack.c.bf16 %v184_v16, %v184_v16  ;;  %v392_v19 = vld [vmem:[%s593_s2] ss:$0 sm:$0xff] }
  0x15   :  { %v368_v20 = vld [vmem:[#allocation2] sm:$0xff] }
  0x16   :  { %256 = vmatpush.bf16.msra.mxu1 %v381_v5  ;;  %v393_v21 = vld [vmem:[%s594_s3] ss:$0 sm:$0xff]  ;;  %s509_s3 = smov [#allocation8]  }
  0x17   :  { %172 = vmatpush.bf16.msra.mxu0 %v373_v8  ;;  %v394_v40 = vld [vmem:[%s598_s7] ss:$0 sm:$0xff]  ;;  %s285_s26 = sshll.u32 %s509_s3, 4  ;;  %s274_s7 = sshll.u32 %s510_s11, 4  ;;  %s286_s26 = int_to_ptr.vmem [resolvable:$true] %s285_s26  ;;  %s275_s7 = int_to_ptr.vmem [resolvable:$true] %s274_s7 }
  0x18   :  { %v395_v45 = vld [vmem:[%s596_s5] ss:$0 sm:$0xff] }
  0x1a   :  { %257 = vmatpush.bf16.msra.mxu1 %v380_v7 }
  0x1b   :  { %173 = vmatpush.bf16.msra.mxu0 %v372_v10 }
  0x1e   :  { %258 = vmatpush.bf16.msra.mxu1 %v379_v9 }
  0x1f   :  { %174 = vmatpush.bf16.msra.mxu0 %v371_v12 }
  0x22   :  { %259 = vmatpush.bf16.msra.mxu1 %v378_v11 }
  0x23   :  { %175 = vmatpush.bf16.msra.mxu0 %v370_v14 }
  0x26   :  { %260 = vmatpush.bf16.msra.mxu1 %v377_v13 }
  0x27   :  { %176 = vmatpush.bf16.msra.mxu0 %v369_v18 }
  0x2a   :  { %261 = vmatpush.bf16.msra.mxu1 %v376_v15 }
  0x2b   :  { %177 = vmatpush.bf16.msra.mxu0 %v368_v20 }
  0x2d   :  { %262 = vmatmul.bf16.vlgmr.msra.gmra.mxu1 %v185_v17 }
  0x81   :  { %v70_v22 = vpop.permute.xlu0 %69 }
  0x82   :  { %v75_v23 = vmul.f32 %v392_v19, %v70_v22 }
  0x84   :  { %v80_v24 = vadd.f32 %v393_v21, %v75_v23 }
  0x86   :  { %v303_v25 = vmul.f32 -1.442695, %v80_v24 }
  0x88   :  { %396 = vpow2.f32 %v303_v25 }
  0x8e   :  { %v397_v26 = vpop.eup %396 }
  0x8f   :  { %v84_v27 = vadd.f32 1.0, %v397_v26 }
  0x91   :  { %398 = vrcp.f32 %v84_v27  ;;  %v96_v31 = vand.u32 2147483648, %v84_v27  ;;  %v94_v33 = vand.u32 2147483647, %v84_v27  ;;  %vm90_vm1 = vweird.f32 %v84_v27 }
  0x93   :  { %v97_v35 = vor.u32 1.1754944e-38, %v96_v31  ;;  %vm95_vm3 = vcmp.eq.f32.partialorder %v94_v33, 8.507059e+37 }
  0x97   :  { %v399_v28 = vpop.eup %398 }
  0x98   :  { %v86_v29 = vmul.f32 %v399_v28, %v84_v27  ;;  %vm91_vm0 = vweird.f32 %v399_v28 }
  0x99   :  { %vm92_vm2 = vmor %vm90_vm1, %vm91_vm0 }
  0x9a   :  { %v87_v30 = vsub.f32 1.0, %v86_v29 }
  0x9c   :  { %v88_v32 = vmul.f32 %v399_v28, %v87_v30 }
  0x9e   :  { %v89_v34 = vadd.f32 %v399_v28, %v88_v32 }
  0xa0   :  { %v93_v36 = vsel %vm92_vm2, %v399_v28, %v89_v34 }
  0xa1   :  { %v98_v37 = vsel %vm95_vm3, %v97_v35, %v93_v36 }
  0xa2   :  { %v100_v38 = vmul.f32 %v98_v37, %v80_v24 }
  0xa4   :  { %v101_v39 = vpack.c.bf16 %v100_v38, %v100_v38 }
  0xa6   :  { %178 = vmatmul.bf16.vlgmr.msra.gmra.mxu0 %v101_v39 }
  0xaa   :  { %v263_v41 = vpop.f32.mrf.mxu1 }
  0xab   :  { %v264_v42 = vadd.f32 %v394_v40, %v263_v41 }
  0xad   :  { %v267_v43 = vpack.c.bf16 %v264_v42, %v264_v42 }
  0xaf   :  { %268 = vst [vmem:[#allocation8] sm:$0x1] %v267_v43 }
  0xb0   :  { %290 = dma.vmem_to_hbm [thread:$0]  %s286_s26, 16, %s288_s29, [#allocation9]  }
  0xb2   :  { %v265_v44 = vpop.f32.mrf.mxu1 }
 0x123   :  { %v179_v46 = vpop.f32.mrf.mxu0 }
 0x124   :  { %v180_v47 = vadd.f32 %v395_v45, %v179_v46 }
 0x126   :  { %183 = vst [vmem:[#allocation7] sm:$0x3] %v180_v47 }
 0x127   :  { %279 = dma.vmem_to_hbm [thread:$0]  %s275_s7, 32, %s277_s14, [#allocation4]  }
 0x12b   :  { %v181_v48 = vpop.f32.mrf.mxu0 }
 0x12c   :  { %500 = dma.done.wait [#allocation4], 32  }
 0x12d   :  { %501 = vsyncadd [#allocation4], 4294967264 }
 0x12e   :  { %502 = dma.done.wait [#allocation9], 16  }
 0x12f   :  { %503 = vsyncadd [#allocation9], 4294967280 }
 0x130   :  { %299 = vsyncpa [#allocation3], 1 }
 0x131   :  { %300 = vsyncpa [#allocation6], 1 }
 0x132   :  { %301 = vsyncpa [#allocation4], 1 }
 0x133   :  { %302 = vsyncpa [#allocation9], 1 }

</bundles_post_ra>
